<compile_context>
chip_gen: v6e
topology: v6e:2x2x1
jax: 0.10.0
libtpu: 0.0.40
codegen_flags: <defaults>
</compile_context>

<pallas_src>
import jax
import jax.numpy as jnp
from jax.experimental import pallas as pl
from jax.experimental.pallas import tpu as pltpu

HIDDEN_STATE_SIZE = 64
LANE = 128
_TB_MAX = 1024  # batch-tile cap; working set stays well inside VMEM on v5e/v6e/v7x


def _dynamics_kernel(h_ref, a_ref, w1h_ref, w1a_ref, b1_ref,
                     w2_ref, b2_ref, w3h_ref, w3r_ref, bout_ref, out_ref):
    # Activations cast to bf16 in-kernel (weights already bf16); accumulate in f32.
    x_h = h_ref[...].astype(jnp.bfloat16)                              # [TB, 64]
    x_a = a_ref[...]                                                   # [TB, A] f32
    w1a = w1a_ref[...]                                                 # [A, 256] f32

    # Fused first layers of both heads (cols 0:128 hidden head, 128:256 reward head),
    # computed directly from the split inputs: one K=64 MXU matmul for the hidden
    # part, plus A unrolled broadcast multiply-adds on the VPU for the (one-hot)
    # action part.  No concatenated input is ever built.
    y = jnp.dot(x_h, w1h_ref[...], preferred_element_type=jnp.float32) + b1_ref[...]
    for j in range(x_a.shape[1]):                                      # A is small & static
        y = y + x_a[:, j:j + 1] * w1a[j:j + 1, :]
    y = jnp.maximum(y, 0.0)                                            # [TB, 256]
    h1 = y[:, 0:128].astype(jnp.bfloat16)                              # hidden head, layer 1
    r1 = y[:, 128:256].astype(jnp.bfloat16)                            # reward head, layer 1

    # Hidden head second layer: Linear(128,128) + ReLU.
    h2 = jnp.dot(h1, w2_ref[...], preferred_element_type=jnp.float32) + b2_ref[...]
    h2 = jnp.maximum(h2, 0.0).astype(jnp.bfloat16)                     # [TB, 128]

    # Fused lane-dense output slab: cols 0:64 = hidden Linear(128,64),
    # col 64 = reward Linear(128,1), cols 65:128 = zero padding.
    out = (jnp.dot(h2, w3h_ref[...], preferred_element_type=jnp.float32)
           + jnp.dot(r1, w3r_ref[...], preferred_element_type=jnp.float32)
           + bout_ref[...])
    out_ref[...] = out.astype(out_ref.dtype)                           # [TB, 128] unmasked store


def _round_up(x, m):
    return ((x + m - 1) // m) * m


def dynamics_forward(h, a, params):
    """h: [B, 64] f32, a: [B, actions] one-hot f32 -> (reward [B], hidden [B, 64])."""
    B = h.shape[0]
    actions = a.shape[1]

    # Batch tiling: weights stay VMEM-resident across grid steps.  For B >= 16 split
    # into at least two tiles so v7x's second TensorCore is not idle; cap at _TB_MAX.
    if B < 16:
        TB = max(8, _round_up(B, 8))
    else:
        TB = min(_TB_MAX, _round_up(-(-B // 2), 8))
    B_pad = _round_up(B, TB)

    if B_pad != B:
        h = jnp.pad(h, ((0, B_pad - B), (0, 0)))
        a = jnp.pad(a, ((0, B_pad - B), (0, 0)))

    grid = (B_pad // TB,)

    out = pl.pallas_call(
        _dynamics_kernel,
        out_shape=jax.ShapeDtypeStruct((B_pad, LANE), jnp.float32),
        grid=grid,
        in_specs=[
            pl.BlockSpec((TB, HIDDEN_STATE_SIZE), lambda i: (i, 0)),   # h  (batch-tiled)
            pl.BlockSpec((TB, actions), lambda i: (i, 0)),             # a  (batch-tiled)
            pl.BlockSpec((HIDDEN_STATE_SIZE, 256), lambda i: (0, 0)),  # w1h fused (resident)
            pl.BlockSpec((actions, 256), lambda i: (0, 0)),            # w1a fused (resident)
            pl.BlockSpec((1, 256), lambda i: (0, 0)),                  # b1 fused
            pl.BlockSpec((LANE, LANE), lambda i: (0, 0)),              # w2 (hidden layer 2)
            pl.BlockSpec((1, LANE), lambda i: (0, 0)),                 # b2
            pl.BlockSpec((LANE, LANE), lambda i: (0, 0)),              # w3h (padded)
            pl.BlockSpec((LANE, LANE), lambda i: (0, 0)),              # w3r (padded)
            pl.BlockSpec((1, LANE), lambda i: (0, 0)),                 # bout fused
        ],
        out_specs=pl.BlockSpec((TB, LANE), lambda i: (i, 0)),
        compiler_params=pltpu.CompilerParams(
            dimension_semantics=("parallel",),
            vmem_limit_bytes=32 * 1024 * 1024),
    )(h, a, params["w1h"], params["w1a"], params["b1"],
      params["w2"], params["b2"], params["w3h"], params["w3r"], params["bout"])

    out = out[:B]
    reward = out[:, HIDDEN_STATE_SIZE]                 # col 64
    hidden = out[:, :HIDDEN_STATE_SIZE]                # cols 0:64
    return reward, hidden


def init_raw_params(key, actions):
    """Per-layer weights in [in, out] layout, PyTorch nn.Linear default init (f32)."""
    D = HIDDEN_STATE_SIZE + actions

    def linear(key, fan_in, fan_out):
        kw, kb = jax.random.split(key)
        bound = 1.0 / (fan_in ** 0.5)
        w = jax.random.uniform(kw, (fan_in, fan_out), jnp.float32, -bound, bound)
        b = jax.random.uniform(kb, (1, fan_out), jnp.float32, -bound, bound)
        return w, b

    keys = jax.random.split(key, 5)
    wr1, br1 = linear(keys[0], D, 128)
    wr2, br2 = linear(keys[1], 128, 1)
    wh1, bh1 = linear(keys[2], D, 128)
    wh2, bh2 = linear(keys[3], 128, 128)
    wh3, bh3 = linear(keys[4], 128, HIDDEN_STATE_SIZE)
    return dict(wr1=wr1, br1=br1, wr2=wr2, br2=br2,
                wh1=wh1, bh1=bh1, wh2=wh2, bh2=bh2, wh3=wh3, bh3=bh3)


def pack_params(raw, actions):
    """Pack per-layer weights into the fused / bf16 kernel layout (no Python ints)."""
    H = HIDDEN_STATE_SIZE

    # Fused first layer: split by input rows (0:64 hidden-state part, 64:D action part),
    # fused by head on the output side (cols 0:128 hidden head, cols 128:256 reward head).
    w1 = jnp.concatenate([raw["wh1"], raw["wr1"]], axis=1)             # [D, 256] f32
    w1h = w1[:H].astype(jnp.bfloat16)                                  # [64, 256] bf16 (MXU)
    w1a = w1[H:]                                                       # [A, 256]  f32  (VPU)
    b1 = jnp.concatenate([raw["bh1"], raw["br1"]], axis=1)             # [1, 256] f32

    w2 = raw["wh2"].astype(jnp.bfloat16)                               # [128, 128] bf16
    b2 = raw["bh2"]                                                    # [1, 128] f32

    # Fused lane-dense output: cols 0:64 hidden state, col 64 reward, rest zero.
    w3h = jnp.zeros((LANE, LANE), jnp.float32)
    w3h = w3h.at[:, :H].set(raw["wh3"]).astype(jnp.bfloat16)
    w3r = jnp.zeros((LANE, LANE), jnp.float32)
    w3r = w3r.at[:, H:H + 1].set(raw["wr2"]).astype(jnp.bfloat16)
    bout = jnp.zeros((1, LANE), jnp.float32)
    bout = bout.at[:, :H].set(raw["bh3"])
    bout = bout.at[:, H:H + 1].set(raw["br2"])

    return dict(w1h=w1h, w1a=w1a, b1=b1, w2=w2, b2=b2,
                w3h=w3h, w3r=w3r, bout=bout)


if __name__ == "__main__":
    key = jax.random.PRNGKey(0)
    k_params, k_h, k_a = jax.random.split(key, 3)

    batch = 8
    actions = 4

    raw = init_raw_params(k_params, actions)
    params = pack_params(raw, actions)

    h = jax.random.normal(k_h, (batch, HIDDEN_STATE_SIZE), jnp.float32)
    a_idx = jax.random.randint(k_a, (batch,), 0, actions)
    a = jax.nn.one_hot(a_idx, actions, dtype=jnp.float32)

    reward, hidden = dynamics_forward(h, a, params)
    jax.block_until_ready((reward, hidden))

    # Sanity: compare against pure-JAX f32 reference of the original module.
    # Tolerance is loosened because the kernel intentionally runs weights /
    # intermediate activations in bfloat16 (f32 accumulation).
    x = jnp.hstack((h, a))
    r_ref = (jnp.maximum(x @ raw["wr1"] + raw["br1"], 0.0) @ raw["wr2"]
             + raw["br2"])[:, 0]
    h1 = jnp.maximum(x @ raw["wh1"] + raw["bh1"], 0.0)
    h2 = jnp.maximum(h1 @ raw["wh2"] + raw["bh2"], 0.0)
    h_ref = h2 @ raw["wh3"] + raw["bh3"]

    assert reward.shape == (batch,)
    assert hidden.shape == (batch, HIDDEN_STATE_SIZE)
    assert jnp.allclose(reward, r_ref, atol=5e-2, rtol=5e-2)
    assert jnp.allclose(hidden, h_ref, atol=5e-2, rtol=5e-2)

    print("KERNEL_OK")
</pallas_src>

<mosaic_0001>
module attributes {stable_mosaic.version = 11 : i64} {
  func.func @_dynamics_kernel(%arg0: i32, %arg1: memref<8x64xf32, #tpu.memory_space<vmem>>, %arg2: memref<8x4xf32, #tpu.memory_space<vmem>>, %arg3: memref<64x256xbf16, #tpu.memory_space<vmem>>, %arg4: memref<4x256xf32, #tpu.memory_space<vmem>>, %arg5: memref<1x256xf32, #tpu.memory_space<vmem>>, %arg6: memref<128x128xbf16, #tpu.memory_space<vmem>>, %arg7: memref<1x128xf32, #tpu.memory_space<vmem>>, %arg8: memref<128x128xbf16, #tpu.memory_space<vmem>>, %arg9: memref<128x128xbf16, #tpu.memory_space<vmem>>, %arg10: memref<1x128xf32, #tpu.memory_space<vmem>>, %arg11: memref<8x128xf32, #tpu.memory_space<vmem>>) attributes {dimension_semantics = [#tpu.dimension_semantics<parallel>], iteration_bounds = array<i64: 1>, scalar_prefetch = 0 : i64, scratch_operands = 0 : i64, tpu.core_type = #tpu.core_type<tc>, window_params = [{transform_indices = @transform_0, window_bounds = array<i64: 8, 64>}, {transform_indices = @transform_1, window_bounds = array<i64: 8, 4>}, {pipeline_mode = #tpu.pipeline_mode<synchronous>, transform_indices = @transform_2, window_bounds = array<i64: 64, 256>}, {pipeline_mode = #tpu.pipeline_mode<synchronous>, transform_indices = @transform_3, window_bounds = array<i64: 4, 256>}, {pipeline_mode = #tpu.pipeline_mode<synchronous>, transform_indices = @transform_4, window_bounds = array<i64: 1, 256>}, {pipeline_mode = #tpu.pipeline_mode<synchronous>, transform_indices = @transform_5, window_bounds = array<i64: 128, 128>}, {pipeline_mode = #tpu.pipeline_mode<synchronous>, transform_indices = @transform_6, window_bounds = array<i64: 1, 128>}, {pipeline_mode = #tpu.pipeline_mode<synchronous>, transform_indices = @transform_7, window_bounds = array<i64: 128, 128>}, {pipeline_mode = #tpu.pipeline_mode<synchronous>, transform_indices = @transform_8, window_bounds = array<i64: 128, 128>}, {pipeline_mode = #tpu.pipeline_mode<synchronous>, transform_indices = @transform_9, window_bounds = array<i64: 1, 128>}, {transform_indices = @transform_10, window_bounds = array<i64: 8, 128>}]} {
    %c0 = arith.constant 0 : index
    %c0_0 = arith.constant 0 : index
    %0 = vector.load %arg1[%c0, %c0_0] : memref<8x64xf32, #tpu.memory_space<vmem>>, vector<8x64xf32>
    %1 = arith.truncf %0 : vector<8x64xf32> to vector<8x64xbf16>
    %c0_1 = arith.constant 0 : index
    %c0_2 = arith.constant 0 : index
    %2 = vector.load %arg2[%c0_1, %c0_2] : memref<8x4xf32, #tpu.memory_space<vmem>>, vector<8x4xf32>
    %c0_3 = arith.constant 0 : index
    %c0_4 = arith.constant 0 : index
    %3 = vector.load %arg4[%c0_3, %c0_4] : memref<4x256xf32, #tpu.memory_space<vmem>>, vector<4x256xf32>
    %c0_5 = arith.constant 0 : index
    %c0_6 = arith.constant 0 : index
    %4 = vector.load %arg3[%c0_5, %c0_6] : memref<64x256xbf16, #tpu.memory_space<vmem>>, vector<64x256xbf16>
    %cst = arith.constant dense<0.000000e+00> : vector<8x256xf32>
    %5 = tpu.matmul %1, %4, %cst {dimension_numbers = #tpu.dot_dimension_numbers<[1], [0], [0], [1], [0, 0, 1, 1], [], []>} : vector<8x64xbf16>, vector<64x256xbf16>, vector<8x256xf32> -> vector<8x256xf32>
    %c0_7 = arith.constant 0 : index
    %c0_8 = arith.constant 0 : index
    %6 = vector.load %arg5[%c0_7, %c0_8] : memref<1x256xf32, #tpu.memory_space<vmem>>, vector<1x256xf32>
    %7 = vector.broadcast %6 : vector<1x256xf32> to vector<8x256xf32>
    %8 = arith.addf %5, %7 : vector<8x256xf32>
    %9 = vector.extract_strided_slice %2 {offsets = [0, 0], sizes = [8, 1], strides = [1, 1]} : vector<8x4xf32> to vector<8x1xf32>
    %10 = vector.extract_strided_slice %3 {offsets = [0, 0], sizes = [1, 256], strides = [1, 1]} : vector<4x256xf32> to vector<1x256xf32>
    %11 = vector.broadcast %9 : vector<8x1xf32> to vector<8x256xf32>
    %12 = vector.broadcast %10 : vector<1x256xf32> to vector<8x256xf32>
    %13 = arith.mulf %11, %12 : vector<8x256xf32>
    %14 = arith.addf %8, %13 : vector<8x256xf32>
    %15 = vector.extract_strided_slice %2 {offsets = [0, 1], sizes = [8, 1], strides = [1, 1]} : vector<8x4xf32> to vector<8x1xf32>
    %16 = vector.extract_strided_slice %3 {offsets = [1, 0], sizes = [1, 256], strides = [1, 1]} : vector<4x256xf32> to vector<1x256xf32>
    %17 = vector.broadcast %15 : vector<8x1xf32> to vector<8x256xf32>
    %18 = vector.broadcast %16 : vector<1x256xf32> to vector<8x256xf32>
    %19 = arith.mulf %17, %18 : vector<8x256xf32>
    %20 = arith.addf %14, %19 : vector<8x256xf32>
    %21 = vector.extract_strided_slice %2 {offsets = [0, 2], sizes = [8, 1], strides = [1, 1]} : vector<8x4xf32> to vector<8x1xf32>
    %22 = vector.extract_strided_slice %3 {offsets = [2, 0], sizes = [1, 256], strides = [1, 1]} : vector<4x256xf32> to vector<1x256xf32>
    %23 = vector.broadcast %21 : vector<8x1xf32> to vector<8x256xf32>
    %24 = vector.broadcast %22 : vector<1x256xf32> to vector<8x256xf32>
    %25 = arith.mulf %23, %24 : vector<8x256xf32>
    %26 = arith.addf %20, %25 : vector<8x256xf32>
    %27 = vector.extract_strided_slice %2 {offsets = [0, 3], sizes = [8, 1], strides = [1, 1]} : vector<8x4xf32> to vector<8x1xf32>
    %28 = vector.extract_strided_slice %3 {offsets = [3, 0], sizes = [1, 256], strides = [1, 1]} : vector<4x256xf32> to vector<1x256xf32>
    %29 = vector.broadcast %27 : vector<8x1xf32> to vector<8x256xf32>
    %30 = vector.broadcast %28 : vector<1x256xf32> to vector<8x256xf32>
    %31 = arith.mulf %29, %30 : vector<8x256xf32>
    %32 = arith.addf %26, %31 : vector<8x256xf32>
    %cst_9 = arith.constant 0.000000e+00 : f32
    %33 = vector.broadcast %cst_9 : f32 to vector<8x256xf32>
    %34 = arith.maximumf %32, %33 : vector<8x256xf32>
    %35 = vector.extract_strided_slice %34 {offsets = [0, 0], sizes = [8, 128], strides = [1, 1]} : vector<8x256xf32> to vector<8x128xf32>
    %36 = arith.truncf %35 : vector<8x128xf32> to vector<8x128xbf16>
    %37 = vector.extract_strided_slice %34 {offsets = [0, 128], sizes = [8, 128], strides = [1, 1]} : vector<8x256xf32> to vector<8x128xf32>
    %38 = arith.truncf %37 : vector<8x128xf32> to vector<8x128xbf16>
    %c0_10 = arith.constant 0 : index
    %c0_11 = arith.constant 0 : index
    %39 = vector.load %arg6[%c0_10, %c0_11] : memref<128x128xbf16, #tpu.memory_space<vmem>>, vector<128x128xbf16>
    %cst_12 = arith.constant dense<0.000000e+00> : vector<8x128xf32>
    %40 = tpu.matmul %36, %39, %cst_12 {dimension_numbers = #tpu.dot_dimension_numbers<[1], [0], [0], [1], [0, 0, 1, 1], [], []>} : vector<8x128xbf16>, vector<128x128xbf16>, vector<8x128xf32> -> vector<8x128xf32>
    %c0_13 = arith.constant 0 : index
    %c0_14 = arith.constant 0 : index
    %41 = vector.load %arg7[%c0_13, %c0_14] : memref<1x128xf32, #tpu.memory_space<vmem>>, vector<1x128xf32>
    %42 = vector.broadcast %41 : vector<1x128xf32> to vector<8x128xf32>
    %43 = arith.addf %40, %42 : vector<8x128xf32>
    %cst_15 = arith.constant 0.000000e+00 : f32
    %44 = vector.broadcast %cst_15 : f32 to vector<8x128xf32>
    %45 = arith.maximumf %43, %44 : vector<8x128xf32>
    %46 = arith.truncf %45 : vector<8x128xf32> to vector<8x128xbf16>
    %c0_16 = arith.constant 0 : index
    %c0_17 = arith.constant 0 : index
    %47 = vector.load %arg8[%c0_16, %c0_17] : memref<128x128xbf16, #tpu.memory_space<vmem>>, vector<128x128xbf16>
    %cst_18 = arith.constant dense<0.000000e+00> : vector<8x128xf32>
    %48 = tpu.matmul %46, %47, %cst_18 {dimension_numbers = #tpu.dot_dimension_numbers<[1], [0], [0], [1], [0, 0, 1, 1], [], []>} : vector<8x128xbf16>, vector<128x128xbf16>, vector<8x128xf32> -> vector<8x128xf32>
    %c0_19 = arith.constant 0 : index
    %c0_20 = arith.constant 0 : index
    %49 = vector.load %arg9[%c0_19, %c0_20] : memref<128x128xbf16, #tpu.memory_space<vmem>>, vector<128x128xbf16>
    %cst_21 = arith.constant dense<0.000000e+00> : vector<8x128xf32>
    %50 = tpu.matmul %38, %49, %cst_21 {dimension_numbers = #tpu.dot_dimension_numbers<[1], [0], [0], [1], [0, 0, 1, 1], [], []>} : vector<8x128xbf16>, vector<128x128xbf16>, vector<8x128xf32> -> vector<8x128xf32>
    %51 = arith.addf %48, %50 : vector<8x128xf32>
    %c0_22 = arith.constant 0 : index
    %c0_23 = arith.constant 0 : index
    %52 = vector.load %arg10[%c0_22, %c0_23] : memref<1x128xf32, #tpu.memory_space<vmem>>, vector<1x128xf32>
    %53 = vector.broadcast %52 : vector<1x128xf32> to vector<8x128xf32>
    %54 = arith.addf %51, %53 : vector<8x128xf32>
    %c0_24 = arith.constant 0 : index
    %c0_25 = arith.constant 0 : index
    %55 = vector.load %arg11[%c0_24, %c0_25] : memref<8x128xf32, #tpu.memory_space<vmem>>, vector<8x128xf32>
    tpu.vector_store %arg11[%c0_24, %c0_25], %54 {strides = array<i32>} : memref<8x128xf32, #tpu.memory_space<vmem>>, vector<8x128xf32>,
    return
  }
  func.func @transform_0(%arg0: i32) -> (i32, i32) {
    %c0_i32 = arith.constant 0 : i32
    %c0_i32_0 = arith.constant 0 : i32
    return %arg0, %c0_i32 : i32, i32
  }
  func.func @transform_1(%arg0: i32) -> (i32, i32) {
    %c0_i32 = arith.constant 0 : i32
    %c0_i32_0 = arith.constant 0 : i32
    return %arg0, %c0_i32 : i32, i32
  }
  func.func @transform_2(%arg0: i32) -> (i32, i32) {
    %c0_i32 = arith.constant 0 : i32
    %c0_i32_0 = arith.constant 0 : i32
    %c0_i32_1 = arith.constant 0 : i32
    return %c0_i32, %c0_i32_0 : i32, i32
  }
  func.func @transform_3(%arg0: i32) -> (i32, i32) {
    %c0_i32 = arith.constant 0 : i32
    %c0_i32_0 = arith.constant 0 : i32
    %c0_i32_1 = arith.constant 0 : i32
    return %c0_i32, %c0_i32_0 : i32, i32
  }
  func.func @transform_4(%arg0: i32) -> (i32, i32) {
    %c0_i32 = arith.constant 0 : i32
    %c0_i32_0 = arith.constant 0 : i32
    %c0_i32_1 = arith.constant 0 : i32
    return %c0_i32, %c0_i32_0 : i32, i32
  }
  func.func @transform_5(%arg0: i32) -> (i32, i32) {
    %c0_i32 = arith.constant 0 : i32
    %c0_i32_0 = arith.constant 0 : i32
    %c0_i32_1 = arith.constant 0 : i32
    return %c0_i32, %c0_i32_0 : i32, i32
  }
  func.func @transform_6(%arg0: i32) -> (i32, i32) {
    %c0_i32 = arith.constant 0 : i32
    %c0_i32_0 = arith.constant 0 : i32
    %c0_i32_1 = arith.constant 0 : i32
    return %c0_i32, %c0_i32_0 : i32, i32
  }
  func.func @transform_7(%arg0: i32) -> (i32, i32) {
    %c0_i32 = arith.constant 0 : i32
    %c0_i32_0 = arith.constant 0 : i32
    %c0_i32_1 = arith.constant 0 : i32
    return %c0_i32, %c0_i32_0 : i32, i32
  }
  func.func @transform_8(%arg0: i32) -> (i32, i32) {
    %c0_i32 = arith.constant 0 : i32
    %c0_i32_0 = arith.constant 0 : i32
    %c0_i32_1 = arith.constant 0 : i32
    return %c0_i32, %c0_i32_0 : i32, i32
  }
  func.func @transform_9(%arg0: i32) -> (i32, i32) {
    %c0_i32 = arith.constant 0 : i32
    %c0_i32_0 = arith.constant 0 : i32
    %c0_i32_1 = arith.constant 0 : i32
    return %c0_i32, %c0_i32_0 : i32, i32
  }
  func.func @transform_10(%arg0: i32) -> (i32, i32) {
    %c0_i32 = arith.constant 0 : i32
    %c0_i32_0 = arith.constant 0 : i32
    return %arg0, %c0_i32 : i32, i32
  }
}

</mosaic_0001>

<bundles_post_ra>
// kernel: tpu_custom_call.1
= control target key start
LH: loop header
LB: loop body
LE: loop exit
PB: predicated region body
PF: predicated region fallthrough
CT: control target
= control target key end

     0   :  { %15 = vsyncpa [#allocation3], 0  ;;  %s1086_s0 = inlined_call_operand.vmem [shape: f32[8,64], index: 0, kind: input, shape index: {}]   ;;  %s1087_s1 = inlined_call_operand.vmem [shape: f32[8,4], index: 1, kind: input, shape index: {}]   ;;  %s1088_s2 = inlined_call_operand.hbm [shape: bf16[64,256], index: 2, kind: input, shape index: {}]   ;;  %s1089_s3 = inlined_call_operand.vmem [shape: f32[4,256], index: 3, kind: input, shape index: {}]   ;;  %s1090_s4 = inlined_call_operand.vmem [shape: f32[1,256], index: 4, kind: input, shape index: {}]   ;;  %s1091_s5 = inlined_call_operand.hbm [shape: bf16[128,128], index: 5, kind: input, shape index: {}]   ;;  %s1092_s6 = inlined_call_operand.vmem [shape: f32[1,128], index: 6, kind: input, shape index: {}]   ;;  %s1093_s7 = inlined_call_operand.hbm [shape: bf16[128,128], index: 7, kind: input, shape index: {}]   ;;  %s1094_s8 = inlined_call_operand.hbm [shape: bf16[128,128], index: 8, kind: input, shape index: {}]   ;;  %s1095_s9 = inlined_call_operand.vmem [shape: f32[1,128], index: 9, kind: input, shape index: {}]   ;;  %s1096_s10 = inlined_call_operand.hbm [shape: f32[8,128], index: 10, kind: output, shape index: {}]  }
   0x1   :  { %16 = vsyncpa [#allocation6], 0 }
   0x2   :  { %17 = vsyncpa [#allocation9], 0 }
   0x3   :  { %18 = vsyncpa [#allocation4], 0  ;;  %s944_s13 = smov [#allocation5]  }
   0x4   :  { %s44_s14 = sshll.u32 %s944_s13, 4  ;;  %s45_s14 = int_to_ptr.vmem [resolvable:$true] %s44_s14 }
   0x5   :  { %s844_s15 = scalar_lea.vmem %s45_s14, 1024  ;;  %p849_p1 = scmp.lt.s32.totalorder %s45_s14, %s45_s14 }
   0x6   :  { %p845_p0 = scmp.ne.s32.totalorder %s45_s14, %s844_s15  ;;  %p850_p2 = scmp.lt.s32.totalorder %s844_s15, %s844_s15 }
   0x8   :  { %p851_p3 = por %p850_p2, %p849_p1 }
   0xa   :  { %p852_p4 = pnand %p851_p3, %p845_p0 }
   0xc   :  { %855 = shalt.err (!%p852_p4)
}
   0xd   :  { %s945_s16 = smov 64   ;;  %s946_s17 = smov 4  }
   0xe   :  { %50 = dma.hbm_to_vmem [thread:$0]  %s1091_s5, 1024, %s45_s14, [#allocation6], %s945_s16, %s945_s16, %s946_s17  }
   0xf   :  { %s947_s20 = smov [#allocation2]  }
  0x10   :  { %s28_s21 = sshll.u32 %s947_s20, 4  ;;  %s29_s21 = int_to_ptr.vmem [resolvable:$true] %s28_s21 }
  0x11   :  { %s864_s22 = scalar_lea.vmem %s29_s21, 1024  ;;  %p869_p6 = scmp.lt.s32.totalorder %s29_s21, %s29_s21 }
  0x12   :  { %p865_p5 = scmp.ne.s32.totalorder %s29_s21, %s864_s22  ;;  %p870_p7 = scmp.lt.s32.totalorder %s864_s22, %s864_s22 }
  0x14   :  { %p871_p8 = por %p870_p7, %p869_p6 }
  0x16   :  { %p872_p9 = pnand %p871_p8, %p865_p5 }
  0x18   :  { %875 = shalt.err (!%p872_p9)
}
  0x19   :  { %s948_s23 = smov 128   ;;  %s949_s24 = smov 8  }
  0x1a   :  { %34 = dma.hbm_to_vmem [thread:$0]  %s1088_s2, 1024, %s29_s21, [#allocation3], %s948_s23, %s948_s23, %s949_s24  }
  0x1b   :  { %s950_s27 = smov [#allocation7]   ;;  %s951_s29 = smov [#allocation8]  }
  0x1c   :  { %s58_s28 = sshll.u32 %s950_s27, 4  ;;  %s70_s5 = sshll.u32 %s951_s29, 4  ;;  %s59_s28 = int_to_ptr.vmem [resolvable:$true] %s58_s28  ;;  %s71_s5 = int_to_ptr.vmem [resolvable:$true] %s70_s5 }
  0x1d   :  { %s884_s30 = scalar_lea.vmem %s59_s28, 1024  ;;  %p889_p11 = scmp.lt.s32.totalorder %s59_s28, %s59_s28 }
  0x1e   :  { %p885_p10 = scmp.ne.s32.totalorder %s59_s28, %s884_s30  ;;  %p890_p12 = scmp.lt.s32.totalorder %s884_s30, %s884_s30 }
  0x20   :  { %p891_p13 = por %p890_p12, %p889_p11 }
  0x22   :  { %p892_p0 = pnand %p891_p13, %p885_p10 }
  0x24   :  { %895 = shalt.err (!%p892_p0)
}
  0x25   :  { %64 = dma.hbm_to_vmem [thread:$0]  %s1093_s7, 1024, %s59_s28, [#allocation6], %s945_s16, %s945_s16, %s946_s17  }
  0x26   :  { %s904_s2 = scalar_lea.vmem %s71_s5, 1024  ;;  %p909_p2 = scmp.lt.s32.totalorder %s71_s5, %s71_s5 }
  0x27   :  { %p905_p1 = scmp.ne.s32.totalorder %s71_s5, %s904_s2  ;;  %p910_p3 = scmp.lt.s32.totalorder %s904_s2, %s904_s2 }
  0x29   :  { %p911_p4 = por %p910_p3, %p909_p2 }
  0x2b   :  { %p912_p5 = pnand %p911_p4, %p905_p1 }
  0x2d   :  { %915 = shalt.err (!%p912_p5)
}
  0x2e   :  { %76 = dma.hbm_to_vmem [thread:$0]  %s1094_s8, 1024, %s71_s5, [#allocation9], %s945_s16, %s945_s16, %s946_s17  }
  0x2f   :  { %936 = dma.done.wait [#allocation3], 1024  }
  0x30   :  { %937 = vsyncadd [#allocation3], 4294966272 }
  0x31   :  { %938 = dma.done.wait [#allocation6], 2048  }
  0x32   :  { %939 = vsyncadd [#allocation6], 4294965248 }
  0x33   :  { %940 = dma.done.wait [#allocation9], 1024  }
  0x34   :  { %941 = vsyncadd [#allocation9], 4294966272  ;;  %v952_v0 = vmov 0   ;;  %v953_v1 = vmov 2   ;;  %v954_v2 = vmov 0.0   ;;  %v94_v8 = vld [vmem:[%s1087_s1] sm:$0xff]  ;;  %v106_v32 = vlaneseq }
  0x35   :  { %192 = vmatprep.mubr.bf16.mxu0 %v952_v0  ;;  %795 = vset.pattern.permute.xlu0 %v952_v0  ;;  %v800_v3 = vld [vmem:[#allocation2 + $0x34] ss:$8 sps:$4 sm:$0xff]   ;;  %v802_v4 = vld [vmem:[#allocation2 + $0x30] ss:$8 sps:$4 sm:$0xff]   ;;  %v803_v5 = vld [vmem:[#allocation2 + $0x24] ss:$8 sps:$4 sm:$0xff]  }
  0x36   :  { %797 = vset.pattern.permute.xlu1 %v953_v1  ;;  %720 = vmatprep.subr.bf16.mxu1 %v954_v2  ;;  %v805_v6 = vld [vmem:[#allocation2 + $0x20] ss:$8 sps:$4 sm:$0xff]   ;;  %v806_v7 = vld [vmem:[#allocation2 + $0x14] ss:$8 sps:$4 sm:$0xff]   ;;  %v808_v10 = vld [vmem:[#allocation2 + $0x10] ss:$8 sps:$4 sm:$0xff]  }
  0x37   :  { %168 = vmatprep.subr.bf16.mxu0 %v800_v3  ;;  %203 = vperm.xlu0 %795, %v94_v8   ;;  %v812_v9 = vld [vmem:[#allocation5 + $0x38] sm:$0xff]   ;;  %v809_v11 = vld [vmem:[#allocation2 + $0x4] ss:$8 sps:$4 sm:$0xff]   ;;  %v814_v12 = vld [vmem:[#allocation5 + $0x30] sm:$0xff]   ;;  %v955_v14 = vmov 1   ;;  %v956_v15 = vmov 3  }
  0x38   :  { %169 = vmatpush1.bf16.msra.mxu0 %v802_v4  ;;  %256 = vperm.xlu1 %797, %v94_v8   ;;  %v811_v13 = vld [vmem:[#allocation2] ss:$8 sps:$4 sm:$0xff]   ;;  %vm156_vm0 = vcmask 523264   ;;  %v813_v19 = vld [vmem:[#allocation8 + $0x38] sm:$0xff]   ;;  %v815_v21 = vld [vmem:[#allocation8 + $0x30] sm:$0xff]   ;;  %vm957_vm1 = vmmov 0  }
  0x39   :  { %170 = vmatprep.subr.bf16.mxu0 %v803_v5  ;;  %721 = vmatpush3.bf16.msra.mxu1 %v812_v9  ;;  %v92_v16 = vld [vmem:[%s1086_s0] sm:$0xff]  ;;  %v816_v17 = vld [vmem:[#allocation5 + $0x28] sm:$0xff]   ;;  %v820_v24 = vld [vmem:[#allocation5 + $0x18] sm:$0xff]   ;;  %v107_v33 = vshrl.u32 %v106_v32, 7  ;;  %s958_s21 = smov [#allocation10]  }
  0x3a   :  { %722 = vmatprep.subr.bf16.mxu1 %v954_v2  ;;  %v93_v18 = vpack.c.bf16 %v92_v16, %v92_v16  ;;  %v818_v20 = vld [vmem:[#allocation5 + $0x20] sm:$0xff]   ;;  %v817_v22 = vld [vmem:[#allocation8 + $0x28] sm:$0xff]   ;;  %v821_v25 = vld [vmem:[#allocation8 + $0x18] sm:$0xff]   ;;  %736 = vmatprep.mubr.msk.bf16.mxu1 %vm957_vm1, %v954_v2  ;;  %s647_s22 = sshll.u32 %s958_s21, 4  ;;  %s648_s22 = int_to_ptr.vmem [resolvable:$true] %s647_s22 }
  0x3b   :  { %796 = vset.pattern.permute.xlu0 %v955_v14  ;;  %v819_v23 = vld [vmem:[#allocation8 + $0x20] sm:$0xff]   ;;  %v822_v26 = vld [vmem:[#allocation5 + $0x10] sm:$0xff]   ;;  %v824_v28 = vld [vmem:[#allocation5 + $0x8] sm:$0xff]   ;;  %v108_v34 = vsub.s32 0, %v107_v33  ;;  %v112_v35 = vsub.s32 1, %v107_v33  ;;  %v213_v37 = vsub.s32 4, %v107_v33  ;;  %p921_p7 = scmp.lt.s32.totalorder %s648_s22, %s648_s22 }
  0x3c   :  { %171 = vmatpush1.bf16.msra.mxu0 %v805_v6  ;;  %798 = vset.pattern.permute.xlu1 %v956_v15  ;;  %v823_v27 = vld [vmem:[#allocation8 + $0x10] sm:$0xff]   ;;  %v825_v29 = vld [vmem:[#allocation8 + $0x8] sm:$0xff]   ;;  %v826_v30 = vld [vmem:[#allocation5] sm:$0xff]   ;;  %v261_v39 = vsub.s32 2, %v107_v33  ;;  %v239_v40 = vsub.s32 5, %v107_v33  ;;  %v287_v43 = vsub.s32 3, %v107_v33 }
  0x3d   :  { %172 = vmatprep.subr.bf16.mxu0 %v806_v7  ;;  %230 = vperm.xlu0 %796, %v94_v8   ;;  %v827_v31 = vld [vmem:[#allocation8] sm:$0xff]   ;;  %v265_v46 = vsub.s32 6, %v107_v33  ;;  %v291_v50 = vsub.s32 7, %v107_v33  ;;  %v832_v33 = vld [vmem:[#allocation7 + $0x18] sm:$0xff]  }
  0x3e   :  { %282 = vperm.xlu1 %798, %v94_v8   ;;  %723 = vmatpush3.bf16.msra.mxu1 %v814_v12  ;;  %v95_v36 = vld [vmem:[%s1089_s3] sm:$0xff] }
  0x3f   :  { %724 = vmatprep.subr.bf16.mxu1 %v954_v2  ;;  %v210_v41 = vrot.slane %v95_v36, %v108_v34  ;;  %v236_v42 = vrot.slane %v95_v36, %v112_v35  ;;  %v104_v44 = vld [vmem:[%s1090_s4] sm:$0x3]  ;;  %v214_v45 = vrot.slane %v95_v36, %v213_v37  ;;  %v262_v47 = vrot.slane %v95_v36, %v261_v39 }
  0x40   :  { %173 = vmatpush1.bf16.msra.mxu0 %v808_v10  ;;  %v240_v49 = vrot.slane %v95_v36, %v239_v40  ;;  %v109_v52 = vrot.slane %v104_v44, %v108_v34  ;;  %v288_v54 = vrot.slane %v95_v36, %v287_v43  ;;  %v266_v57 = vrot.slane %v95_v36, %v265_v46  ;;  %v831_v32 = vld [vmem:[#allocation7 + $0x20] sm:$0xff]  }
  0x41   :  { %174 = vmatprep.subr.bf16.mxu0 %v809_v11  ;;  %799 = vset.pattern.permute.xlu0 %v956_v15  ;;  %v220_v51 = vrot.slane %v210_v41, %v108_v34  ;;  %v246_v53 = vrot.slane %v236_v42, %v112_v35  ;;  %v224_v56 = vrot.slane %v214_v45, %v108_v34  ;;  %v833_v34 = vld [vmem:[#allocation7 + $0x10] sm:$0xff]   ;;  %v667_v37 = vld [vmem:[%s1092_s6] ss:$0 sm:$0xff]  ;;  %s916_s6 = scalar_lea.vmem %s648_s22, 128 }
  0x42   :  { %725 = vmatpush3.bf16.msra.mxu1 %v816_v17  ;;  %v113_v58 = vrot.slane %v104_v44, %v112_v35  ;;  %v272_v60 = vrot.slane %v262_v47, %v261_v39  ;;  %v250_v61 = vrot.slane %v240_v49, %v112_v35  ;;  %v292_v62 = vrot.slane %v95_v36, %v291_v50  ;;  %v834_v35 = vld [vmem:[#allocation7 + $0x8] sm:$0xff]   ;;  %v835_v36 = vld [vmem:[#allocation7] sm:$0xff]   ;;  %p917_p6 = scmp.ne.s32.totalorder %s648_s22, %s916_s6  ;;  %p922_p8 = scmp.lt.s32.totalorder %s916_s6, %s916_s6 }
  0x43   :  { %726 = vmatprep.subr.bf16.mxu1 %v954_v2  ;;  %v298_v3 = vrot.slane %v288_v54, %v287_v43  ;;  %v276_v8 = vrot.slane %v266_v57, %v261_v39 }
  0x44   :  { %175 = vmatpush1.bf16.msra.mxu0 %v811_v13  ;;  %v302_v12 = vrot.slane %v292_v62, %v287_v43  ;;  %p923_p9 = por %p922_p8, %p921_p7 }
  0x45   :  { %740 = vmatprep.subr.bf16.mxu0 %v954_v2 }
  0x46   :  { %727 = vmatpush3.bf16.msra.mxu1 %v818_v20  ;;  %p924_p10 = pnand %p923_p9, %p917_p6 }
  0x47   :  { %666 = vmatmul.mubr.msk.bf16.vlgmr.msra.gmra.mxu0 %vm156_vm0, %v93_v18  ;;  %728 = vmatprep.subr.bf16.mxu1 %v954_v2 }
  0x48   :  { %741 = vmatpush3.bf16.msra.mxu0 %v813_v19  ;;  %756 = vmatprep.mubr.msk.bf16.mxu0 %vm957_vm1, %v954_v2 }
  0x49   :  { %742 = vmatprep.subr.bf16.mxu0 %v954_v2 }
  0x4a   :  { %729 = vmatpush3.bf16.msra.mxu1 %v820_v24 }
  0x4b   :  { %730 = vmatprep.subr.bf16.mxu1 %v954_v2 }
  0x4c   :  { %743 = vmatpush3.bf16.msra.mxu0 %v815_v21 }
  0x4d   :  { %744 = vmatprep.subr.bf16.mxu0 %v954_v2 }
  0x4e   :  { %731 = vmatpush3.bf16.msra.mxu1 %v822_v26  ;;  %v828_v26 = vld [vmem:[#allocation7 + $0x38] sm:$0xff]  }
  0x4f   :  { %732 = vmatprep.subr.bf16.mxu1 %v954_v2 }
  0x50   :  { %745 = vmatpush3.bf16.msra.mxu0 %v817_v22 }
  0x51   :  { %746 = vmatprep.subr.bf16.mxu0 %v954_v2 }
  0x52   :  { %733 = vmatpush3.bf16.msra.mxu1 %v824_v28 }
  0x53   :  { %734 = vmatprep.subr.bf16.mxu1 %v954_v2 }
  0x54   :  { %747 = vmatpush3.bf16.msra.mxu0 %v819_v23 }
  0x55   :  { %748 = vmatprep.subr.bf16.mxu0 %v954_v2 }
  0x56   :  { %735 = vmatpush3.bf16.msra.mxu1 %v826_v30  ;;  %v829_v30 = vld [vmem:[#allocation7 + $0x30] sm:$0xff]  }
  0x57   :  { %760 = vmatprep.subr.bf16.mxu1 %v954_v2 }
  0x58   :  { %749 = vmatpush3.bf16.msra.mxu0 %v821_v25 }
  0x59   :  { %750 = vmatprep.subr.bf16.mxu0 %v954_v2 }
  0x5c   :  { %751 = vmatpush3.bf16.msra.mxu0 %v823_v27 }
  0x5d   :  { %752 = vmatprep.subr.bf16.mxu0 %v954_v2 }
  0x60   :  { %753 = vmatpush3.bf16.msra.mxu0 %v825_v29 }
  0x61   :  { %754 = vmatprep.subr.bf16.mxu0 %v954_v2 }
  0x64   :  { %755 = vmatpush3.bf16.msra.mxu0 %v827_v31  ;;  %v830_v31 = vld [vmem:[#allocation7 + $0x28] sm:$0xff]  }
  0xb2   :  { %v204_v38 = vpop.permute.xlu0 %203 }
  0xb3   :  { %v257_v48 = vpop.permute.xlu1 %256  ;;  %v225_v63 = vmul.f32 %v220_v51, %v204_v38  ;;  %v226_v6 = vmul.f32 %v224_v56, %v204_v38 }
  0xb4   :  { %v277_v10 = vmul.f32 %v272_v60, %v257_v48  ;;  %v278_v18 = vmul.f32 %v276_v8, %v257_v48 }
  0xb8   :  { %v231_v55 = vpop.permute.xlu0 %230 }
  0xb9   :  { %v251_v1 = vmul.f32 %v246_v53, %v231_v55  ;;  %v283_v5 = vpop.permute.xlu1 %282  ;;  %v252_v13 = vmul.f32 %v250_v61, %v231_v55 }
  0xba   :  { %v303_v16 = vmul.f32 %v298_v3, %v283_v5  ;;  %v304_v22 = vmul.f32 %v302_v12, %v283_v5 }
 0x107   :  { %v194_v59 = vpop.f32.mrf.mxu0 }
 0x108   :  { %v195_v0 = vadd.f32 %v194_v59, %v109_v52 }
 0x109   :  { %v196_v4 = vpop.f32.mrf.mxu0 }
 0x10a   :  { %v227_v7 = vadd.f32 %v225_v63, %v195_v0  ;;  %v197_v9 = vadd.f32 %v196_v4, %v113_v58 }
 0x10b   :  { %v198_v11 = vpop.f32.mrf.mxu0 }
 0x10c   :  { %v253_v14 = vadd.f32 %v251_v1, %v227_v7  ;;  %v228_v15 = vadd.f32 %v226_v6, %v197_v9 }
 0x10d   :  { %v199_v17 = vpop.f32.mrf.mxu0 }
 0x10e   :  { %v254_v19 = vadd.f32 %v252_v13, %v228_v15  ;;  %v279_v20 = vadd.f32 %v277_v10, %v253_v14 }
 0x110   :  { %v280_v21 = vadd.f32 %v278_v18, %v254_v19  ;;  %v305_v23 = vadd.f32 %v303_v16, %v279_v20 }
 0x112   :  { %v306_v24 = vadd.f32 %v304_v22, %v280_v21  ;;  %v307_v25 = vmax.f32 %v305_v23, 0.0 }
 0x114   :  { %v308_v27 = vmax.f32 %v306_v24, 0.0  ;;  %v309_v28 = vpack.c.bf16 %v307_v25, %v307_v25 }
 0x116   :  { %v310_v29 = vpack.c.bf16 %v308_v27, %v308_v27  ;;  %737 = vmatmul.mubr.bf16.vlgmr.msra.gmra.mxu1 %v309_v28 }
 0x117   :  { %761 = vmatpush3.bf16.msra.mxu1 %v828_v26  ;;  %776 = vmatprep.mubr.msk.bf16.mxu1 %vm957_vm1, %v954_v2 }
 0x118   :  { %757 = vmatmul.mubr.bf16.vlgmr.msra.gmra.mxu0 %v310_v29  ;;  %762 = vmatprep.subr.bf16.mxu1 %v954_v2 }
 0x11b   :  { %763 = vmatpush3.bf16.msra.mxu1 %v829_v30 }
 0x11c   :  { %764 = vmatprep.subr.bf16.mxu1 %v954_v2 }
 0x11f   :  { %765 = vmatpush3.bf16.msra.mxu1 %v830_v31 }
 0x120   :  { %766 = vmatprep.subr.bf16.mxu1 %v954_v2 }
 0x123   :  { %767 = vmatpush3.bf16.msra.mxu1 %v831_v32 }
 0x124   :  { %768 = vmatprep.subr.bf16.mxu1 %v954_v2 }
 0x127   :  { %769 = vmatpush3.bf16.msra.mxu1 %v832_v33 }
 0x128   :  { %770 = vmatprep.subr.bf16.mxu1 %v954_v2 }
 0x12b   :  { %771 = vmatpush3.bf16.msra.mxu1 %v833_v34 }
 0x12c   :  { %772 = vmatprep.subr.bf16.mxu1 %v954_v2 }
 0x12f   :  { %773 = vmatpush3.bf16.msra.mxu1 %v834_v35 }
 0x130   :  { %774 = vmatprep.subr.bf16.mxu1 %v954_v2  ;;  %v692_v2 = vld [vmem:[%s1095_s9] ss:$0 sm:$0xff] }
 0x133   :  { %775 = vmatpush3.bf16.msra.mxu1 %v835_v36 }
 0x1d6   :  { %v416_v38 = vpop.f32.mrf.mxu1 }
 0x1d7   :  { %v417_v39 = vadd.f32 %v667_v37, %v416_v38 }
 0x1d8   :  { %v738_v40 = vpop.f32.mrf.mxu1  ;;  %v538_v41 = vpop.f32.mrf.mxu0 }
 0x1d9   :  { %v422_v42 = vmax.f32 %v417_v39, 0.0 }
 0x1da   :  { %v419_v43 = vpop.f32.mrf.mxu1  ;;  %v758_v44 = vpop.f32.mrf.mxu0 }
 0x1db   :  { %v423_v45 = vpack.c.bf16 %v422_v42, %v422_v42 }
 0x1dc   :  { %v739_v46 = vpop.f32.mrf.mxu1  ;;  %v541_v47 = vpop.f32.mrf.mxu0 }
 0x1dd   :  { %777 = vmatmul.mubr.bf16.vlgmr.msra.gmra.mxu1 %v423_v45 }
 0x1de   :  { %v759_v48 = vpop.f32.mrf.mxu0 }
 0x29d   :  { %v626_v49 = vpop.f32.mrf.mxu1 }
 0x29e   :  { %v627_v50 = vadd.f32 %v626_v49, %v538_v41 }
 0x29f   :  { %v778_v51 = vpop.f32.mrf.mxu1 }
 0x2a0   :  { %v639_v52 = vadd.f32 %v692_v2, %v627_v50 }
 0x2a1   :  { %v629_v53 = vpop.f32.mrf.mxu1 }
 0x2a2   :  { %640 = vst [vmem:[#allocation10] sm:$0xff] %v639_v52 }
 0x2a3   :  { %v779_v54 = vpop.f32.mrf.mxu1 }
 0x2a4   :  { %927 = shalt.err (!%p924_p10)
}
 0x2a5   :  { %650 = dma.vmem_to_hbm [thread:$0]  %s648_s22, 128, %s1096_s10, [#allocation4]  }
 0x2a6   :  { %942 = dma.done.wait [#allocation4], 128  }
 0x2a7   :  { %943 = vsyncadd [#allocation4], 4294967168 }
 0x2a8   :  { %654 = vsyncpa [#allocation3], 1 }
 0x2a9   :  { %655 = vsyncpa [#allocation6], 1 }
 0x2aa   :  { %656 = vsyncpa [#allocation9], 1 }
 0x2ab   :  { %657 = vsyncpa [#allocation4], 1 }

</bundles_post_ra>
